<compile_context>
chip_gen: v6e
topology: v6e:2x2x1
jax: 0.10.0
libtpu: 0.0.40
codegen_flags: <defaults>
</compile_context>

<pallas_src>
import jax
import jax.numpy as jnp
from jax.experimental import pallas as pl
from jax.experimental.pallas import tpu as pltpu

D_IN, H1, H2, D_OUT = 4, 64, 32, 3
D_IN_PAD = 8  # zero-pad K=4 -> 8 so the layer-1 MXU operands are sublane-aligned


def _round_up(n, m):
    return ((n + m - 1) // m) * m


def mlp_kernel(x_ref, w1_ref, b1_ref, w2_ref, b2_ref, w3_ref, b3_ref, o_ref):
    # ---- Layer 1 on the MXU (bf16 inputs, f32 accumulation). The wasted MXU
    # rows (K=8 of 128/256) are free: the MXU has large slack on this workload
    # while the VALU slot was previously binding.
    x = x_ref[...].astype(jnp.bfloat16)                         # (TB, 8)
    h1 = jnp.dot(x, w1_ref[...], preferred_element_type=jnp.float32)
    h1 = jnp.maximum(h1 + b1_ref[...], 0.0)                     # (TB, 64) f32

    # ---- Layer 2: bf16 MXU matmul with f32 accumulation --------------------
    h2 = jnp.dot(h1.astype(jnp.bfloat16), w2_ref[...],
                 preferred_element_type=jnp.float32)
    h2 = jnp.maximum(h2 + b2_ref[...], 0.0)                     # (TB, 32) f32

    # ---- Layer 3: bf16 MXU matmul with f32 accumulation --------------------
    o = jnp.dot(h2.astype(jnp.bfloat16), w3_ref[...],
                preferred_element_type=jnp.float32)
    # Bias-add stays f32 on the VPU.  (D_OUT=3 -> masked vst; store slot is not
    # binding here, so the transposed lane-dense output was not applied.)
    o_ref[...] = o + b3_ref[...]                                # (TB, 3)  f32


def neural_net_forward(x, params, *, block_batch=4096):
    """Fused 3-layer MLP forward. x: (B, 4) f32 -> (B, 3) f32."""
    w1, b1, w2, b2, w3, b3 = params
    B = x.shape[0]

    # Batch tile: multiple of 8 (sublane), capped at block_batch.  When the
    # batch is big enough, also cap at ceil(B/2) so the grid has >= 2 steps and
    # v7x's two TensorCores both get work (no effect on v5e/v6e).
    tb = min(block_batch, _round_up(max(B, 1), 8))
    if B >= 16:
        tb = min(tb, _round_up(pl.cdiv(B, 2), 8))
    tb = max(8, _round_up(tb, 8))

    b_pad = _round_up(B, tb)
    # Pad batch to a tile multiple and features 4 -> 8 (zeros; exact).
    x_p = jnp.pad(x, ((0, b_pad - B), (0, D_IN_PAD - D_IN)))
    grid = (b_pad // tb,)

    # bf16 weights for the MXU (f32 accumulate keeps precision); w1 row-padded
    # with zeros to match the padded feature dim.
    w1b = jnp.pad(w1, ((0, D_IN_PAD - D_IN), (0, 0))).astype(jnp.bfloat16)
    w2b = w2.astype(jnp.bfloat16)
    w3b = w3.astype(jnp.bfloat16)

    def resident(shape):
        # Weights/biases: same block every grid step -> DMA'd once, stay in VMEM.
        return pl.BlockSpec(shape, lambda i: (0, 0))

    out = pl.pallas_call(
        mlp_kernel,
        out_shape=jax.ShapeDtypeStruct((b_pad, D_OUT), jnp.float32),
        grid_spec=pltpu.PrefetchScalarGridSpec(
            num_scalar_prefetch=0,
            grid=grid,
            in_specs=[
                pl.BlockSpec((tb, D_IN_PAD), lambda i: (i, 0)),  # x: tiled over batch
                resident((D_IN_PAD, H1)),
                resident((1, H1)),
                resident((H1, H2)),
                resident((1, H2)),
                resident((H2, D_OUT)),
                resident((1, D_OUT)),
            ],
            out_specs=pl.BlockSpec((tb, D_OUT), lambda i: (i, 0)),
        ),
        compiler_params=pltpu.CompilerParams(
            dimension_semantics=("parallel",),        # megacore split on v7x
            # ~16 MiB/tile at tb=4096 (lane-padded x/out dominate); 48 MiB limit
            # leaves headroom for larger block_batch while staying under v7x's
            # 64 MiB physical VMEM per TensorCore.
            vmem_limit_bytes=48 * 1024 * 1024,
        ),
    )(x_p, w1b, b1, w2b, b2, w3b, b3)

    # Padded batch rows produce nonzero intermediates (ReLU of biases); they are
    # sliced off here and the padded buffer is never aliased back to user memory.
    return out[:B] if b_pad != B else out


def init_params(key):
    """Deterministic init mimicking PyTorch nn.Linear default (uniform +-1/sqrt(fan_in))."""
    ks = jax.random.split(key, 6)

    def layer(kw, kb, fan_in, fan_out):
        bound = 1.0 / jnp.sqrt(fan_in)
        w = jax.random.uniform(kw, (fan_in, fan_out), jnp.float32, -bound, bound)
        b = jax.random.uniform(kb, (1, fan_out), jnp.float32, -bound, bound)
        return w, b

    w1, b1 = layer(ks[0], ks[1], D_IN, H1)
    w2, b2 = layer(ks[2], ks[3], H1, H2)
    w3, b3 = layer(ks[4], ks[5], H2, D_OUT)
    return (w1, b1, w2, b2, w3, b3)


def reference_forward_f32(x, params):
    """Pure-f32 reference (original PyTorch semantics)."""
    w1, b1, w2, b2, w3, b3 = params
    h1 = jnp.maximum(x @ w1 + b1, 0.0)
    h2 = jnp.maximum(h1 @ w2 + b2, 0.0)
    return h2 @ w3 + b3


def reference_forward_bf16(x, params):
    """Reference with the same bf16-input / f32-accumulate matmuls as the kernel."""
    w1, b1, w2, b2, w3, b3 = params
    h1 = jnp.dot(x.astype(jnp.bfloat16), w1.astype(jnp.bfloat16),
                 preferred_element_type=jnp.float32) + b1
    h1 = jnp.maximum(h1, 0.0)
    h2 = jnp.dot(h1.astype(jnp.bfloat16), w2.astype(jnp.bfloat16),
                 preferred_element_type=jnp.float32) + b2
    h2 = jnp.maximum(h2, 0.0)
    return jnp.dot(h2.astype(jnp.bfloat16), w3.astype(jnp.bfloat16),
                   preferred_element_type=jnp.float32) + b3


if __name__ == "__main__":
    key = jax.random.PRNGKey(0)
    k_x, k_p = jax.random.split(key)
    params = init_params(k_p)

    # Case 1: tiny batch, single tile.
    # Case 2: mid batch with default tile -> exercises the >=2-grid-step cap.
    # Case 3: multi-tile with a ragged tail (300 rows, 128-row tiles).
    cases = [(8, None), (40, None), (300, 128)]
    for B, bb in cases:
        x = jax.random.normal(jax.random.fold_in(k_x, B), (B, D_IN), jnp.float32)
        kwargs = {} if bb is None else {"block_batch": bb}
        out = jax.block_until_ready(neural_net_forward(x, params, **kwargs))
        assert out.shape == (B, D_OUT), out.shape

        ref_bf16 = reference_forward_bf16(x, params)
        assert jnp.allclose(out, ref_bf16, atol=2e-3, rtol=2e-3), \
            "mismatch vs bf16-matched reference"

        ref_f32 = reference_forward_f32(x, params)
        assert jnp.allclose(out, ref_f32, atol=1e-1, rtol=1e-1), \
            "mismatch vs f32 reference (bf16 error too large)"

    print("KERNEL_OK")
</pallas_src>

<mosaic_0001>
module attributes {stable_mosaic.version = 11 : i64} {
  func.func @mlp_kernel(%arg0: i32, %arg1: memref<8x8xf32, #tpu.memory_space<vmem>>, %arg2: memref<8x64xbf16, #tpu.memory_space<vmem>>, %arg3: memref<1x64xf32, #tpu.memory_space<vmem>>, %arg4: memref<64x32xbf16, #tpu.memory_space<vmem>>, %arg5: memref<1x32xf32, #tpu.memory_space<vmem>>, %arg6: memref<32x3xbf16, #tpu.memory_space<vmem>>, %arg7: memref<1x3xf32, #tpu.memory_space<vmem>>, %arg8: memref<8x3xf32, #tpu.memory_space<vmem>>) attributes {dimension_semantics = [#tpu.dimension_semantics<parallel>], iteration_bounds = array<i64: 1>, scalar_prefetch = 0 : i64, scratch_operands = 0 : i64, tpu.core_type = #tpu.core_type<tc>, window_params = [{transform_indices = @transform_0, window_bounds = array<i64: 8, 8>}, {pipeline_mode = #tpu.pipeline_mode<synchronous>, transform_indices = @transform_1, window_bounds = array<i64: 8, 64>}, {pipeline_mode = #tpu.pipeline_mode<synchronous>, transform_indices = @transform_2, window_bounds = array<i64: 1, 64>}, {pipeline_mode = #tpu.pipeline_mode<synchronous>, transform_indices = @transform_3, window_bounds = array<i64: 64, 32>}, {pipeline_mode = #tpu.pipeline_mode<synchronous>, transform_indices = @transform_4, window_bounds = array<i64: 1, 32>}, {pipeline_mode = #tpu.pipeline_mode<synchronous>, transform_indices = @transform_5, window_bounds = array<i64: 32, 3>}, {pipeline_mode = #tpu.pipeline_mode<synchronous>, transform_indices = @transform_6, window_bounds = array<i64: 1, 3>}, {transform_indices = @transform_7, window_bounds = array<i64: 8, 3>}]} {
    %c0 = arith.constant 0 : index
    %c0_0 = arith.constant 0 : index
    %0 = vector.load %arg1[%c0, %c0_0] : memref<8x8xf32, #tpu.memory_space<vmem>>, vector<8x8xf32>
    %1 = arith.truncf %0 : vector<8x8xf32> to vector<8x8xbf16>
    %c0_1 = arith.constant 0 : index
    %c0_2 = arith.constant 0 : index
    %2 = vector.load %arg2[%c0_1, %c0_2] : memref<8x64xbf16, #tpu.memory_space<vmem>>, vector<8x64xbf16>
    %cst = arith.constant dense<0.000000e+00> : vector<8x64xf32>
    %3 = tpu.matmul %1, %2, %cst {dimension_numbers = #tpu.dot_dimension_numbers<[1], [0], [0], [1], [0, 0, 1, 1], [], []>} : vector<8x8xbf16>, vector<8x64xbf16>, vector<8x64xf32> -> vector<8x64xf32>
    %c0_3 = arith.constant 0 : index
    %c0_4 = arith.constant 0 : index
    %4 = vector.load %arg3[%c0_3, %c0_4] : memref<1x64xf32, #tpu.memory_space<vmem>>, vector<1x64xf32>
    %5 = vector.broadcast %4 : vector<1x64xf32> to vector<8x64xf32>
    %6 = arith.addf %3, %5 : vector<8x64xf32>
    %cst_5 = arith.constant 0.000000e+00 : f32
    %7 = vector.broadcast %cst_5 : f32 to vector<8x64xf32>
    %8 = arith.maximumf %6, %7 : vector<8x64xf32>
    %9 = arith.truncf %8 : vector<8x64xf32> to vector<8x64xbf16>
    %c0_6 = arith.constant 0 : index
    %c0_7 = arith.constant 0 : index
    %10 = vector.load %arg4[%c0_6, %c0_7] : memref<64x32xbf16, #tpu.memory_space<vmem>>, vector<64x32xbf16>
    %cst_8 = arith.constant dense<0.000000e+00> : vector<8x32xf32>
    %11 = tpu.matmul %9, %10, %cst_8 {dimension_numbers = #tpu.dot_dimension_numbers<[1], [0], [0], [1], [0, 0, 1, 1], [], []>} : vector<8x64xbf16>, vector<64x32xbf16>, vector<8x32xf32> -> vector<8x32xf32>
    %c0_9 = arith.constant 0 : index
    %c0_10 = arith.constant 0 : index
    %12 = vector.load %arg5[%c0_9, %c0_10] : memref<1x32xf32, #tpu.memory_space<vmem>>, vector<1x32xf32>
    %13 = vector.broadcast %12 : vector<1x32xf32> to vector<8x32xf32>
    %14 = arith.addf %11, %13 : vector<8x32xf32>
    %cst_11 = arith.constant 0.000000e+00 : f32
    %15 = vector.broadcast %cst_11 : f32 to vector<8x32xf32>
    %16 = arith.maximumf %14, %15 : vector<8x32xf32>
    %17 = arith.truncf %16 : vector<8x32xf32> to vector<8x32xbf16>
    %c0_12 = arith.constant 0 : index
    %c0_13 = arith.constant 0 : index
    %18 = vector.load %arg6[%c0_12, %c0_13] : memref<32x3xbf16, #tpu.memory_space<vmem>>, vector<32x3xbf16>
    %cst_14 = arith.constant dense<0.000000e+00> : vector<8x3xf32>
    %19 = tpu.matmul %17, %18, %cst_14 {dimension_numbers = #tpu.dot_dimension_numbers<[1], [0], [0], [1], [0, 0, 1, 1], [], []>} : vector<8x32xbf16>, vector<32x3xbf16>, vector<8x3xf32> -> vector<8x3xf32>
    %c0_15 = arith.constant 0 : index
    %c0_16 = arith.constant 0 : index
    %20 = vector.load %arg7[%c0_15, %c0_16] : memref<1x3xf32, #tpu.memory_space<vmem>>, vector<1x3xf32>
    %21 = vector.broadcast %20 : vector<1x3xf32> to vector<8x3xf32>
    %22 = arith.addf %19, %21 : vector<8x3xf32>
    %c0_17 = arith.constant 0 : index
    %c0_18 = arith.constant 0 : index
    %23 = vector.load %arg8[%c0_17, %c0_18] : memref<8x3xf32, #tpu.memory_space<vmem>>, vector<8x3xf32>
    tpu.vector_store %arg8[%c0_17, %c0_18], %22 {strides = array<i32>} : memref<8x3xf32, #tpu.memory_space<vmem>>, vector<8x3xf32>,
    return
  }
  func.func @transform_0(%arg0: i32) -> (i32, i32) {
    %c0_i32 = arith.constant 0 : i32
    %c0_i32_0 = arith.constant 0 : i32
    return %arg0, %c0_i32 : i32, i32
  }
  func.func @transform_1(%arg0: i32) -> (i32, i32) {
    %c0_i32 = arith.constant 0 : i32
    %c0_i32_0 = arith.constant 0 : i32
    %c0_i32_1 = arith.constant 0 : i32
    return %c0_i32, %c0_i32_0 : i32, i32
  }
  func.func @transform_2(%arg0: i32) -> (i32, i32) {
    %c0_i32 = arith.constant 0 : i32
    %c0_i32_0 = arith.constant 0 : i32
    %c0_i32_1 = arith.constant 0 : i32
    return %c0_i32, %c0_i32_0 : i32, i32
  }
  func.func @transform_3(%arg0: i32) -> (i32, i32) {
    %c0_i32 = arith.constant 0 : i32
    %c0_i32_0 = arith.constant 0 : i32
    %c0_i32_1 = arith.constant 0 : i32
    return %c0_i32, %c0_i32_0 : i32, i32
  }
  func.func @transform_4(%arg0: i32) -> (i32, i32) {
    %c0_i32 = arith.constant 0 : i32
    %c0_i32_0 = arith.constant 0 : i32
    %c0_i32_1 = arith.constant 0 : i32
    return %c0_i32, %c0_i32_0 : i32, i32
  }
  func.func @transform_5(%arg0: i32) -> (i32, i32) {
    %c0_i32 = arith.constant 0 : i32
    %c0_i32_0 = arith.constant 0 : i32
    %c0_i32_1 = arith.constant 0 : i32
    return %c0_i32, %c0_i32_0 : i32, i32
  }
  func.func @transform_6(%arg0: i32) -> (i32, i32) {
    %c0_i32 = arith.constant 0 : i32
    %c0_i32_0 = arith.constant 0 : i32
    %c0_i32_1 = arith.constant 0 : i32
    return %c0_i32, %c0_i32_0 : i32, i32
  }
  func.func @transform_7(%arg0: i32) -> (i32, i32) {
    %c0_i32 = arith.constant 0 : i32
    %c0_i32_0 = arith.constant 0 : i32
    return %arg0, %c0_i32 : i32, i32
  }
}

</mosaic_0001>

<bundles_post_ra>
// kernel: tpu_custom_call.1
= control target key start
LH: loop header
LB: loop body
LE: loop exit
PB: predicated region body
PF: predicated region fallthrough
CT: control target
= control target key end

     0   :  { %vm41_vm0 = vcmask 1043456   ;;  %v301_v0 = vmov 0.0   ;;  %vm302_vm1 = vmmov 0   ;;  %vm37_vm2 = vcmask 64512   ;;  %s379_s1 = inlined_call_operand.vmem [shape: bf16[8,64], index: 1, kind: input, shape index: {}]   ;;  %s380_s0 = inlined_call_operand.vmem [shape: f32[8,8], index: 0, kind: input, shape index: {}]   ;;  %s381_s3 = inlined_call_operand.vmem [shape: bf16[64,32], index: 3, kind: input, shape index: {}]   ;;  %s382_s5 = inlined_call_operand.vmem [shape: bf16[32,3], index: 5, kind: input, shape index: {}]   ;;  %s383_s2 = inlined_call_operand.vmem [shape: f32[1,64], index: 2, kind: input, shape index: {}]   ;;  %s384_s4 = inlined_call_operand.vmem [shape: f32[1,32], index: 4, kind: input, shape index: {}]   ;;  %s385_s6 = inlined_call_operand.vmem [shape: f32[1,3], index: 6, kind: input, shape index: {}]   ;;  %s386_s7 = inlined_call_operand.vmem [shape: f32[8,3], index: 7, kind: output, shape index: {}]  }
   0x1   :  { %267 = vmatprep.subr.bf16.mxu0 %v301_v0  ;;  %v29_v1 = vld [vmem:[%s379_s1] sm:$0xf]  ;;  %269 = vmatprep.mubr.msk.bf16.mxu0 %vm302_vm1, %v301_v0  ;;  %v295_v5 = vld [vmem:[%s381_s3 + $0x18] sm:$0xff]   ;;  %v296_v6 = vld [vmem:[%s381_s3 + $0x10] sm:$0xff]   ;;  %vm126_vm3 = vcmask 523264   ;;  %vm195_vm4 = vcmask 261120  }
   0x2   :  { %v27_v2 = vld [vmem:[%s380_s0] sm:$0xff]  ;;  %v43_v3 = vsel %vm41_vm0, %v29_v1, 0  ;;  %273 = vmatprep.subr.bf16.mxu1 %v301_v0  ;;  %281 = vmatprep.mubr.msk.bf16.mxu1 %vm302_vm1, %v301_v0  ;;  %v297_v7 = vld [vmem:[%s381_s3 + $0x8] sm:$0xff]   ;;  %vm239_vm5 = vcmask 23552  }
   0x3   :  { %v28_v4 = vpack.c.bf16 %v27_v2, %v27_v2  ;;  %268 = vmatpush3.bf16.msra.mxu0 %v43_v3  ;;  %274 = vmatpush3.bf16.msra.mxu1 %v295_v5  ;;  %v298_v8 = vld [vmem:[%s381_s3] sm:$0xff]   ;;  %v299_v9 = vld [vmem:[%s382_s5 + $0x8] sm:$0xff]  }
   0x4   :  { %285 = vmatprep.subr.bf16.mxu0 %v301_v0  ;;  %275 = vmatprep.subr.bf16.mxu1 %v301_v0  ;;  %v245_v10 = vld [vmem:[%s383_s2] ss:$0 sm:$0xff] }
   0x5   :  { %v300_v18 = vld [vmem:[%s382_s5] sm:$0xff]  }
   0x6   :  { %270 = vmatmul.mubr.msk.bf16.vlgmr.msra.gmra.mxu0 %vm37_vm2, %v28_v4  ;;  %v247_v19 = vld [vmem:[%s384_s4] ss:$0 sm:$0xff] }
   0x7   :  { %289 = vmatprep.mubr.msk.bf16.mxu0 %vm302_vm1, %v301_v0  ;;  %276 = vmatpush3.bf16.msra.mxu1 %v296_v6  ;;  %v253_v27 = vld [vmem:[%s385_s6] ss:$0 sm:$0xff] }
   0x8   :  { %277 = vmatprep.subr.bf16.mxu1 %v301_v0  ;;  %286 = vmatpush3.bf16.msra.mxu0 %v299_v9 }
   0x9   :  { %287 = vmatprep.subr.bf16.mxu0 %v301_v0 }
   0xb   :  { %278 = vmatpush3.bf16.msra.mxu1 %v297_v7 }
   0xc   :  { %279 = vmatprep.subr.bf16.mxu1 %v301_v0  ;;  %288 = vmatpush3.bf16.msra.mxu0 %v300_v18 }
   0xf   :  { %280 = vmatpush3.bf16.msra.mxu1 %v298_v8 }
  0xc6   :  { %v79_v11 = vpop.f32.mrf.mxu0 }
  0xc7   :  { %v80_v12 = vadd.f32 %v245_v10, %v79_v11 }
  0xc8   :  { %v271_v13 = vpop.f32.mrf.mxu0 }
  0xc9   :  { %v85_v14 = vmax.f32 %v80_v12, 0.0 }
  0xca   :  { %v82_v15 = vpop.f32.mrf.mxu0 }
  0xcb   :  { %v86_v16 = vpack.c.bf16 %v85_v14, %v85_v14 }
  0xcc   :  { %v272_v17 = vpop.f32.mrf.mxu0 }
  0xcd   :  { %282 = vmatmul.mubr.msk.bf16.vlgmr.msra.gmra.mxu1 %vm126_vm3, %v86_v16 }
 0x18d   :  { %v164_v20 = vpop.f32.mrf.mxu1 }
 0x18e   :  { %v165_v21 = vadd.f32 %v247_v19, %v164_v20 }
 0x18f   :  { %v283_v22 = vpop.f32.mrf.mxu1 }
 0x190   :  { %v170_v23 = vmax.f32 %v165_v21, 0.0 }
 0x191   :  { %v167_v24 = vpop.f32.mrf.mxu1 }
 0x192   :  { %v171_v25 = vpack.c.bf16 %v170_v23, %v170_v23 }
 0x193   :  { %v284_v26 = vpop.f32.mrf.mxu1 }
 0x194   :  { %290 = vmatmul.mubr.msk.bf16.vlgmr.msra.gmra.mxu0 %vm195_vm4, %v171_v25 }
 0x254   :  { %v233_v28 = vpop.f32.mrf.mxu0 }
 0x255   :  { %v234_v29 = vadd.f32 %v253_v27, %v233_v28 }
 0x256   :  { %v291_v30 = vpop.f32.mrf.mxu0 }
 0x257   :  { %240 = vst.msk [vmem:[%s386_s7] sm:$0xff] %vm239_vm5, %v234_v29 }
 0x258   :  { %v236_v31 = vpop.f32.mrf.mxu0 }
 0x25a   :  { %v292_v32 = vpop.f32.mrf.mxu0 }

</bundles_post_ra>
